<compile_context>
chip_gen: v5e
topology: v5e:2x2
jax: 0.10.0
libtpu: 0.0.40
codegen_flags: <defaults>
</compile_context>

<pallas_src>
import numpy as np

import jax
import jax.numpy as jnp
from jax.experimental import pallas as pl
from jax.experimental.pallas import tpu as pltpu


def _ddpm_blend_kernel(ab_ref, x0_ref, eps_ref, xt_ref):
    """One grid step == one (block_b, block_n) tile of the flattened (B, C*H*W) array.

    ab_ref  : VMEM (block_b, 2) f32   [:, 0] = sqrt(alpha_bar), [:, 1] = sqrt(1-alpha_bar)
    x0_ref  : VMEM (block_b, block_n)
    eps_ref : VMEM (block_b, block_n)
    xt_ref  : VMEM (block_b, block_n) output: noised sample
    """
    a = ab_ref[:, 0:1]   # (block_b, 1), broadcasts along lanes
    b = ab_ref[:, 1:2]
    xt_ref[...] = (a * x0_ref[...] + b * eps_ref[...]).astype(xt_ref.dtype)


def ddpm_dynamic_forward(x0, key, *, min_temp=1e-4, max_temp=100.0,
                         block_b_target=8, block_n_target=65536):
    """Pallas implementation of DDPMDynamic.forward (linear_beta schedule)."""
    B, C, H, W = x0.shape
    N = C * H * W

    k_tau, k_eps = jax.random.split(key)

    # tau ~ U[0,1) per batch element (matches torch.rand((len(x0),))).
    tau = jax.random.uniform(k_tau, (B,), dtype=jnp.float32)

    # linear_beta temp schedule -> per-batch blend scalars, hoisted out of the kernel.
    scale = 1.0 + float(min_temp)
    gamma = float(np.log((1.0 + float(max_temp)) / scale))
    temp = jnp.exp(tau * tau * gamma) * scale - 1.0
    alpha_bar = 1.0 / (temp + 1.0)
    ab = jnp.stack(
        [jnp.sqrt(alpha_bar), jnp.sqrt(1.0 - alpha_bar)], axis=-1
    ).astype(jnp.float32)                                   # (B, 2)

    # eps ~ N(0,1): generated by XLA in the wrapper (exact, key-reproducible).
    eps = jax.random.normal(k_eps, x0.shape, dtype=x0.dtype)

    x0_flat = x0.reshape(B, N)
    eps_flat = eps.reshape(B, N)

    # Lane/sublane-dense tiling: block dims are either the full array extent or
    # multiples of (8, 128).  ~2 MiB f32 blocks sit on the HBM roofline plateau.
    block_b = B if B < block_b_target else block_b_target
    block_n = N if N <= block_n_target else block_n_target

    # v7x has 2 TensorCores; make sure the parallel grid has >= 2 blocks when the
    # shape allows it (halving keeps block_n a multiple of 128).
    while (pl.cdiv(B, block_b) * pl.cdiv(N, block_n) < 2
           and block_n >= 256 and block_n % 256 == 0):
        block_n //= 2

    grid = (pl.cdiv(B, block_b), pl.cdiv(N, block_n))

    xt_flat = pl.pallas_call(
        _ddpm_blend_kernel,
        out_shape=jax.ShapeDtypeStruct((B, N), x0.dtype),
        grid=grid,
        in_specs=[
            pl.BlockSpec((block_b, 2), lambda i, j: (i, 0)),          # ab scalars
            pl.BlockSpec((block_b, block_n), lambda i, j: (i, j)),    # x0
            pl.BlockSpec((block_b, block_n), lambda i, j: (i, j)),    # eps
        ],
        out_specs=pl.BlockSpec((block_b, block_n), lambda i, j: (i, j)),
        compiler_params=pltpu.CompilerParams(
            dimension_semantics=("parallel", "parallel"),
            vmem_limit_bytes=48 * 1024 * 1024,
        ),
        cost_estimate=pl.CostEstimate(
            flops=3 * B * N,
            transcendentals=0,
            bytes_accessed=12 * B * N,   # read x0 + eps, write xt (f32)
        ),
    )(ab, x0_flat, eps_flat)

    xt = xt_flat.reshape(B, C, H, W)
    return tau, eps, xt


def _reference_forward(x0, tau, eps, *, min_temp=1e-4, max_temp=100.0):
    """Pure-JAX reference blend for correctness checking (uses the returned tau/eps)."""
    scale = 1.0 + min_temp
    gamma = np.log((1.0 + max_temp) / scale)
    temp = jnp.exp(tau ** 2 * gamma) * scale - 1.0
    alpha_bar = (1.0 / (temp + 1.0)).reshape(-1, 1, 1, 1)
    return jnp.sqrt(alpha_bar) * x0 + jnp.sqrt(1.0 - alpha_bar) * eps


# TODO(synk): 'cosine' and 'entropy' temp schedules from the config are not
# implemented here; only the 'linear_beta' branch of get_temp_schedule is covered.

if __name__ == "__main__":
    key = jax.random.PRNGKey(0)
    k_x0, k_fwd = jax.random.split(key)

    # Small shapes consistent with the module's obj_size = (C, H, W).
    B, C, H, W = 2, 4, 16, 16
    x0 = jax.random.normal(k_x0, (B, C, H, W), dtype=jnp.float32)

    tau, eps, xt = ddpm_dynamic_forward(x0, k_fwd)
    jax.block_until_ready((tau, eps, xt))

    assert tau.shape == (B,)
    assert eps.shape == x0.shape and xt.shape == x0.shape

    # xt must equal sqrt(alpha_bar)*x0 + sqrt(1-alpha_bar)*eps for the returned (tau, eps).
    xt_ref = _reference_forward(x0, tau, eps)
    np.testing.assert_allclose(np.asarray(xt), np.asarray(xt_ref), rtol=1e-5, atol=1e-5)

    # tau in [0, 1), eps finite.
    assert np.all(np.asarray(tau) >= 0.0) and np.all(np.asarray(tau) < 1.0)
    assert np.all(np.isfinite(np.asarray(eps)))

    print("KERNEL_OK")
</pallas_src>

<mosaic_0001>
module attributes {stable_mosaic.version = 11 : i64} {
  func.func @_ddpm_blend_kernel(%arg0: i32, %arg1: i32, %arg2: memref<2x2xf32, #tpu.memory_space<vmem>>, %arg3: memref<2x512xf32, #tpu.memory_space<vmem>>, %arg4: memref<2x512xf32, #tpu.memory_space<vmem>>, %arg5: memref<2x512xf32, #tpu.memory_space<vmem>>) attributes {dimension_semantics = [#tpu.dimension_semantics<parallel>, #tpu.dimension_semantics<parallel>], iteration_bounds = array<i64: 1, 2>, scalar_prefetch = 0 : i64, scratch_operands = 0 : i64, tpu.core_type = #tpu.core_type<tc>, window_params = [{transform_indices = @transform_0, window_bounds = array<i64: 2, 2>}, {transform_indices = @transform_1, window_bounds = array<i64: 2, 512>}, {transform_indices = @transform_2, window_bounds = array<i64: 2, 512>}, {transform_indices = @transform_3, window_bounds = array<i64: 2, 512>}]} {
    %c0 = arith.constant 0 : index
    %c0_0 = arith.constant 0 : index
    %0 = vector.load %arg2[%c0, %c0_0] : memref<2x2xf32, #tpu.memory_space<vmem>>, vector<2x1xf32>
    %c0_1 = arith.constant 0 : index
    %c1 = arith.constant 1 : index
    %1 = vector.load %arg2[%c0_1, %c1] : memref<2x2xf32, #tpu.memory_space<vmem>>, vector<2x1xf32>
    %c0_2 = arith.constant 0 : index
    %c0_3 = arith.constant 0 : index
    %2 = vector.load %arg3[%c0_2, %c0_3] : memref<2x512xf32, #tpu.memory_space<vmem>>, vector<2x512xf32>
    %3 = vector.broadcast %0 : vector<2x1xf32> to vector<2x512xf32>
    %4 = arith.mulf %3, %2 : vector<2x512xf32>
    %c0_4 = arith.constant 0 : index
    %c0_5 = arith.constant 0 : index
    %5 = vector.load %arg4[%c0_4, %c0_5] : memref<2x512xf32, #tpu.memory_space<vmem>>, vector<2x512xf32>
    %6 = vector.broadcast %1 : vector<2x1xf32> to vector<2x512xf32>
    %7 = arith.mulf %6, %5 : vector<2x512xf32>
    %8 = arith.addf %4, %7 : vector<2x512xf32>
    %c0_6 = arith.constant 0 : index
    %c0_7 = arith.constant 0 : index
    %9 = vector.load %arg5[%c0_6, %c0_7] : memref<2x512xf32, #tpu.memory_space<vmem>>, vector<2x512xf32>
    tpu.vector_store %arg5[%c0_6, %c0_7], %8 {strides = array<i32>} : memref<2x512xf32, #tpu.memory_space<vmem>>, vector<2x512xf32>,
    return
  }
  func.func @transform_0(%arg0: i32, %arg1: i32) -> (i32, i32) {
    %c0_i32 = arith.constant 0 : i32
    %c0_i32_0 = arith.constant 0 : i32
    return %arg0, %c0_i32 : i32, i32
  }
  func.func @transform_1(%arg0: i32, %arg1: i32) -> (i32, i32) {
    %c0_i32 = arith.constant 0 : i32
    return %arg0, %arg1 : i32, i32
  }
  func.func @transform_2(%arg0: i32, %arg1: i32) -> (i32, i32) {
    %c0_i32 = arith.constant 0 : i32
    return %arg0, %arg1 : i32, i32
  }
  func.func @transform_3(%arg0: i32, %arg1: i32) -> (i32, i32) {
    %c0_i32 = arith.constant 0 : i32
    return %arg0, %arg1 : i32, i32
  }
}

</mosaic_0001>

<bundles_post_ra>
// kernel: tpu_custom_call.1
= control target key start
LH: loop header
LB: loop body
LE: loop exit
PB: predicated region body
PF: predicated region fallthrough
CT: control target
= control target key end

     0   :  { %8 = vsyncpa [#allocation3], 0  ;;  %s951_s0 = inlined_call_operand.hbm [shape: f32[2,2], index: 0, kind: input, shape index: {}]   ;;  %s952_s1 = inlined_call_operand.hbm [shape: f32[2,1024], index: 1, kind: input, shape index: {}]   ;;  %s953_s2 = inlined_call_operand.hbm [shape: f32[2,1024], index: 2, kind: input, shape index: {}]   ;;  %s954_s3 = inlined_call_operand.hbm [shape: f32[2,1024], index: 3, kind: output, shape index: {}]  }
   0x1   :  { %9 = vsyncpa [#allocation6], 0 }
   0x2   :  { %11 = vsyncpa [#allocation6 + $0x1], 0 }
   0x3   :  { %12 = vsyncpa [#allocation4], 0 }
   0x4   :  { %14 = vsyncpa [#allocation4 + $0x1], 0  ;;  %s779_s12 = smov 0   ;;  %s781_s13 = smov 0  }
   0x5   :  { %s783_s14 = smov 0   ;;  %s785_s15 = smov 0  }
   0x6   :  { %s787_s16 = smov 0   ;;  %s789_s17 = smov 0  }
   0x7 LB: > { %s29_s18 = sadd.s32 1, %s750_s16  ;;  %s67_s19 = sadd.s32 1, %s742_s14  ;;  %s754_s17 = sphi %s789_s17, %s20_s17   ;;  %s750_s16 = sphi %s787_s16, %s965_s16   ;;  %s746_s15 = sphi %s785_s15, %s964_s15   ;;  %s742_s14 = sphi %s783_s14, %s963_s14   ;;  %s738_s13 = sphi %s781_s13, %s962_s13   ;;  %s734_s12 = sphi %s779_s12, %s961_s12  }
   0x8   : > { %p30_p0 = scmp.ge.s32.totalorder %s29_s18, 2  ;;  %p74_p1 = scmp.ne.s32.totalorder %s742_s14, %s738_s13 }
   0x9   : > { %p75_p2 = scmp.eq.s32.totalorder %s754_s17, 0  ;;  %p476_p3 = scmp.ge.s32.totalorder %s754_s17, 2 }
   0xa   : > { %s967_s18 = smov (%p30_p0, %s29_s18), 0  ;;  %p522_p5 = scmp.lt.s32.totalorder %s754_s17, 2 }
   0xb   : > { %p820_p4 = por %p75_p2, %p74_p1  ;;  %s63_s21 = ssub.s32 %s750_s16, %s967_s18 }
   0xc   : > { %s174_s22 = sand.u32 1, %s754_s17   ;;  %p65_p6 = scmp.eq.s32.totalorder %s63_s21, 0 }
   0xd   : > { %s176_s23 = sand.u32 1, %s742_s14   ;;  %s493_s24 = sshll.u32 %s750_s16, 3 }
   0xe   : > { %s831_s25 = scalar_select %p65_p6, %s742_s14, %s67_s19  }
   0xf   : > { %s833_s26 = sshll.u32 %s176_s23, 3  ;;  %s185_s29 = scalar_lea.hbm %s952_s1, %s493_s24 }
  0x10   : > { %s187_s30 = sshll.u32 %s185_s29, 4  ;;  %s178_s4 = scalar_lea.vmem [#allocation5], %s833_s26  ;;  %s188_s30 = int_to_ptr.hbm [resolvable:$true] %s187_s30 }
  0x11   : > { %s189_s5 = sshll.u32 %s178_s4, 4  ;;  %p843_p7 = pnand %p522_p5, %p820_p4  ;;  %s190_s5 = int_to_ptr.vmem [resolvable:$true] %s189_s5 }
  0x12   : > { %s207_s9 = scalar_lea.hbm %s953_s2, %s493_s24  ;;  %s175_s10 = scalar_lea.sflag [#allocation6], %s174_s22 }
  0x13   : > { %513 = dma.hbm_to_vmem [thread:$0]  (!%p843_p7), %s188_s30, 128, %s190_s5, %s175_s10  }
  0x14   : > { %s853_s11 = sadd.s32 4294967295, %s754_s17   ;;  %s473_s19 = sadd.s32 4294967294, %s754_s17  }
  0x15   : > { %p80_p8 = scmp.ne.s32.totalorder %s738_s13, %s734_s12  ;;  %p81_p9 = scmp.eq.s32.totalorder %s853_s11, 0 }
  0x16   : > { %p134_p10 = scmp.eq.s32.totalorder %s853_s11, 1  ;;  %p140_p11 = scmp.eq.s32.totalorder %s473_s19, 1 }
  0x17   : > { %p474_p12 = scmp.ge.s32.totalorder %s754_s17, 1  ;;  %p863_p13 = por %p81_p9, %p80_p8 }
  0x18   : > { %p870_p0 = por %p134_p10, %p74_p1  ;;  %p874_p2 = por %p140_p11, %p80_p8 }
  0x19   : > { %p147_p4 = scmp.lt.s32.totalorder %s754_s17, 3  ;;  %s161_s28 = sshll.u32 %s951_s0, 4  ;;  %s162_s28 = int_to_ptr.hbm [resolvable:$true] %s161_s28 }
  0x1a   : > { %s209_s29 = sshll.u32 %s207_s9, 4  ;;  %s756_s30 = smov [#allocation2]   ;;  %s210_s29 = int_to_ptr.hbm [resolvable:$true] %s209_s29 }
  0x1b   : > { %p879_p5 = pnand %p474_p12, %p147_p4  ;;  %s163_s4 = sshll.u32 %s756_s30, 4  ;;  %s164_s4 = int_to_ptr.vmem [resolvable:$true] %s163_s4 }
  0x1c   : > { %s200_s5 = scalar_lea.vmem [#allocation7], %s833_s26 }
  0x1d   : > { %p506_p1 = pneg %p879_p5  ;;  %s211_s7 = sshll.u32 %s200_s5, 4  ;;  %s212_s7 = int_to_ptr.vmem [resolvable:$true] %s211_s7 }
  0x1e   : > { %516 = dma.hbm_to_vmem [thread:$0]  (!%p843_p7), %s210_s29, 128, %s212_s7, %s175_s10  }
  0x1f   : > { %p507_p6 = pnand %p506_p1, %p81_p9  ;;  %220 = sbr.rel (%p879_p5) target bundleno = 178 (0xb2), region = 32 }
  0x21   : > { %509 = dma.hbm_to_vmem [thread:$0]  (!%p507_p6), %s162_s28, 32, %s164_s4, [#allocation3]  }
  0x24   : > { %721 = dma.done.wait (%p81_p9), [#allocation3], 32  }
  0x25   : > { %723 = vsyncadd (%p81_p9), [#allocation3], 4294967264  ;;  %s227_s26 = sand.u32 1, %s853_s11   ;;  %s229_s8 = sand.u32 1, %s738_s13  }
  0x26   : > { %s903_s9 = sshll.u32 %s229_s8, 3  ;;  %s228_s6 = scalar_lea.sflag [#allocation6], %s227_s26 }
  0x27   : > { %s231_s10 = scalar_lea.vmem [#allocation5], %s903_s9 }
  0x28   : > { %725 = dma.done.wait (%p863_p13), %s228_s6, 256  }
  0x29   : > { %727 = vsyncadd (%p863_p13), %s228_s6, 4294967040  ;;  %v757_v0 = vmov 0   ;;  %v273_v1 = vld [vmem:[#allocation2] sm:$0x3]  ;;  %v274_v2 = vld [vmem:[%s231_s10] sm:$0xff]  ;;  %s241_s11 = scalar_lea.vmem [#allocation7], %s903_s9 }
  0x2a   : > { %576 = vset.pattern.permute.xlu0 %v757_v0  ;;  %281 = vst [vmem:[#allocation1] ss:$4 sm:$0xff] %v274_v2  ;;  %v294_v3 = vld [vmem:[%s241_s11] sm:$0xff]  ;;  %v758_v6 = vmov 1   ;;  %s495_s19 = sshll.u32 %s746_s15, 3  ;;  %vm324_vm0 = vcmask 1041408  }
  0x2b   : > { %277 = vperm.xlu0 %576, %v273_v1   ;;  %s346_s24 = scalar_lea.hbm %s954_s3, %s495_s19  ;;  %vm326_vm1 = vcmask 1045508   ;;  %vm328_vm2 = vcmask 1043456   ;;  %s269_s15 = scalar_lea.vmem [#allocation8], %s903_s9 }
  0x2c   : > { %s348_s27 = sshll.u32 %s269_s15, 4  ;;  %s350_s28 = sshll.u32 %s346_s24, 4  ;;  %s349_s27 = int_to_ptr.vmem [resolvable:$true] %s348_s27  ;;  %s351_s28 = int_to_ptr.hbm [resolvable:$true] %s350_s28 }
  0x2d   : > { %s333_s29 = scalar_lea.sflag [#allocation4], %s229_s8  ;;  %s682_s30 = sshra.s32 %s351_s28, 4  ;;  %s683_s30 = int_to_ptr.hbm [resolvable:$true] %s682_s30 }
  0x2e   : > { %s684_s4 = scalar_lea.hbm %s683_s30, 8  ;;  %s688_s26 = scalar_lea.hbm %s954_s3, 16 }
  0x2f   : > { %p685_p7 = scmp.ne.s32.totalorder %s683_s30, %s684_s4  ;;  %p689_p10 = scmp.lt.s32.totalorder %s683_s30, %s954_s3 }
  0x30   : > { %p690_p11 = scmp.lt.s32.totalorder %s688_s26, %s684_s4 }
  0x31   : > { %v282_v4 = vld.sshfl [vmem:[#allocation1] sm:$0xff pattern:$0x73625140]  ;;  %v283_v5 = vld.sshfl [vmem:[#allocation1 + $0x8] sm:$0xff pattern:$0x73625140]  ;;  %p686_p8 = pnand %p685_p7, %p870_p0 }
  0x32   : > { %v284_v7 = vld.sshfl [vmem:[#allocation1 + $0x10] sm:$0xff pattern:$0x73625140]  ;;  %v285_v8 = vld.sshfl [vmem:[#allocation1 + $0x18] sm:$0xff pattern:$0x73625140]  ;;  %p691_p12 = por %p690_p11, %p689_p10 }
  0x33   : > { %577 = vset.pattern.permute.xlu0 %v758_v6  ;;  %300 = vst [vmem:[#allocation1] ss:$4 sm:$0xff] %v294_v3  ;;  %p687_p9 = pneg %p686_p8 }
  0x34   : > { %296 = vperm.xlu0 %577, %v273_v1  }
  0x35   : > { %p692_p13 = pnand %p691_p12, %p687_p9 }
  0x3a   : > { %v301_v10 = vld.sshfl [vmem:[#allocation1] sm:$0xff pattern:$0x73625140]  ;;  %v302_v11 = vld.sshfl [vmem:[#allocation1 + $0x8] sm:$0xff pattern:$0x73625140] }
  0x3b   : > { %v303_v12 = vld.sshfl [vmem:[#allocation1 + $0x10] sm:$0xff pattern:$0x73625140]  ;;  %v304_v13 = vld.sshfl [vmem:[#allocation1 + $0x18] sm:$0xff pattern:$0x73625140] }
  0x9d   : > { %v278_v9 = vpop.permute.xlu0 %277 }
  0x9e   : > { %v291_v14 = vmul.f32 %v283_v5, %v278_v9  ;;  %v292_v15 = vmul.f32 %v284_v7, %v278_v9  ;;  %v293_v16 = vmul.f32 %v285_v8, %v278_v9  ;;  %v290_v22 = vmul.f32 %v282_v4, %v278_v9 }
  0xa6   : > { %v297_v17 = vpop.permute.xlu0 %296 }
  0xa7   : > { %v309_v18 = vmul.f32 %v301_v10, %v297_v17  ;;  %v310_v19 = vmul.f32 %v302_v11, %v297_v17  ;;  %v311_v20 = vmul.f32 %v303_v12, %v297_v17  ;;  %v312_v21 = vmul.f32 %v304_v13, %v297_v17 }
  0xa9   : > { %v314_v23 = vadd.f32 %v310_v19, %v291_v14  ;;  %v315_v24 = vadd.f32 %v311_v20, %v292_v15  ;;  %v316_v25 = vadd.f32 %v312_v21, %v293_v16  ;;  %v313_v26 = vadd.f32 %v309_v18, %v290_v22 }
  0xab   : > { %v321_v27 = vrot.slane %v314_v23, 6  ;;  %v322_v28 = vrot.slane %v315_v24, 4  ;;  %v323_v29 = vrot.slane %v316_v25, 2 }
  0xad   : > { %v325_v30 = vsel %vm324_vm0, %v313_v26, %v321_v27  ;;  %v327_v31 = vsel %vm326_vm1, %v322_v28, %v323_v29 }
  0xae   : > { %v329_v32 = vsel %vm328_vm2, %v325_v30, %v327_v31 }
  0xaf   : > { %331 = vst [vmem:[%s269_s15] sm:$0xff] %v329_v32 }
  0xb0   : > { %695 = shalt.err (!%p692_p13)
}
  0xb1   : > { %504 = dma.vmem_to_hbm [thread:$0]  (%p870_p0), %s349_s27, 128, %s351_s28, %s333_s29  }
  0xb2 PF: > { %s362_s8 = sand.u32 1, %s734_s12   ;;  %p518_p4 = pnand %p476_p3, %p874_p2 }
  0xb3   : > { %s363_s10 = scalar_lea.sflag [#allocation4], %s362_s8 }
  0xb4   : > { %p519_p5 = pneg %p518_p4 }
  0xb6   : > { %729 = dma.done.wait (%p519_p5), %s363_s10, 128  }
  0xb7   : > { %731 = vsyncadd (%p519_p5), %s363_s10, 4294967168  ;;  %s20_s17 = sadd.s32 1, %s754_s17   ;;  %s961_s12 = smov %s738_s13 }
  0xb8   : > { %p17_p1 = scmp.ge.s32.totalorder %s20_s17, 4   ;;  %s962_s13 = smov %s742_s14 }
  0xb9   : > { %s963_s14 = smov %s831_s25  ;;  %s964_s15 = smov %s750_s16 }
  0xba   : > { %s965_s16 = smov %s967_s18  ;;  %19 = sbr.rel (!%p17_p1) target bundleno = 7 (0x7), region = 94 }
  0xbf   :  { %369 = vsyncpa [#allocation3], 1 }
  0xc0   :  { %371 = vsyncpa [#allocation3 + $0x1], 1 }
  0xc1   :  { %372 = vsyncpa [#allocation6], 1 }
  0xc2   :  { %374 = vsyncpa [#allocation6 + $0x1], 1 }
  0xc3   :  { %375 = vsyncpa [#allocation4], 1 }
  0xc4   :  { %377 = vsyncpa [#allocation4 + $0x1], 1 }

</bundles_post_ra>
